<compile_context>
chip_gen: v6e
topology: v6e:2x2x1
jax: 0.10.0
libtpu: 0.0.40
codegen_flags: <defaults>
</compile_context>

<pallas_src>
import math

import jax
import jax.numpy as jnp
from jax.experimental import pallas as pl
from jax.experimental.pallas import tpu as pltpu


def _round_up(x, m):
    return ((x + m - 1) // m) * m


def _pick_divisor_tile(total, max_tile, align):
    """Largest multiple of `align` <= max_tile that divides `total` (total % align == 0)."""
    t = max(align, min(max_tile, total))
    t = (t // align) * align
    while total % t:
        t -= align
    return t


# ------------------------------- Pallas kernel ------------------------------ #

def _swiglu_kernel(x_ref, w1_ref, w2_ref, w3_ref, o_ref, acc_ref):
    """One (row-tile, hidden-tile) grid step.

    x_ref  : (tm, E_pad)       activation rows (bf16)
    w1_ref : (E_pad, th)       W1^T hidden-column tile (bf16)  -> gate branch
    w2_ref : (E_pad, th)       W2^T hidden-column tile (bf16)  -> value branch
    w3_ref : (th, E_pad)       W3^T hidden-row tile (bf16)
    o_ref  : (tm, E_pad)       output rows, resident across the hidden axis
    acc_ref: (tm, E_pad) f32   accumulator scratch
    """
    j = pl.program_id(1)

    @pl.when(j == 0)
    def _():
        acc_ref[...] = jnp.zeros_like(acc_ref)

    x = x_ref[...]
    # Two MXU matmuls with f32 accumulation (gate / value branches).
    h1 = jnp.dot(x, w1_ref[...], preferred_element_type=jnp.float32)
    h2 = jnp.dot(x, w2_ref[...], preferred_element_type=jnp.float32)
    # swish(h1) * h2 in f32: sigmoid lands on the EUP slot, multiplies on the VPU.
    gated = (h1 * jax.nn.sigmoid(h1)) * h2
    # Down-projection partial sum for this hidden tile.
    acc_ref[...] += jnp.dot(gated.astype(w3_ref.dtype), w3_ref[...],
                            preferred_element_type=jnp.float32)

    @pl.when(j == pl.num_programs(1) - 1)
    def _():
        o_ref[...] = acc_ref[...].astype(o_ref.dtype)


# ----------------------------- wrapper / weight prep ------------------------ #

def prepare_swiglu_weights(w1, w2, w3, *, compute_dtype=jnp.bfloat16):
    """One-time packing of PyTorch-layout weights for the kernel.

    w1, w2 : (H, E)  nn.Linear weight layout (out_features, in_features)
    w3     : (E, H)
    Returns (w1t, w2t, w3t) in (in, out) layout, bf16, zero-padded to 128-lane
    multiples. Call once and cache; do NOT rebuild per forward call.
    """
    H, E = w1.shape
    E_pad = _round_up(E, 128)
    H_pad = _round_up(H, 128)
    w1t = jnp.pad(w1.T.astype(compute_dtype), ((0, E_pad - E), (0, H_pad - H)))
    w2t = jnp.pad(w2.T.astype(compute_dtype), ((0, E_pad - E), (0, H_pad - H)))
    w3t = jnp.pad(w3.T.astype(compute_dtype), ((0, H_pad - H), (0, E_pad - E)))
    return w1t, w2t, w3t


def swiglu_forward(x, prepared, *, block_rows=512, block_hidden=1024,
                   compute_dtype=jnp.bfloat16):
    """SWiGLU forward.  x: (B, T, E); prepared: output of prepare_swiglu_weights."""
    w1t, w2t, w3t = prepared
    B, T, E = x.shape
    E_pad, H_pad = w1t.shape
    M = B * T

    # Row tiling: ensure >= 2 grid steps whenever M allows, so the "parallel"
    # row axis shards across both v7x TensorCores (neutral on v5e/v6e).
    row_align = 16  # bf16 sublane packing
    tm = min(block_rows, max(row_align, _round_up(pl.cdiv(M, 2), row_align)))
    m_pad = _round_up(M, tm)
    # Hidden (reduction) tiling: innermost / "arbitrary" grid axis.
    th = _pick_divisor_tile(H_pad, block_hidden, 128)
    grid = (m_pad // tm, H_pad // th)

    xm = x.reshape(M, E).astype(compute_dtype)
    if m_pad != M or E_pad != E:
        # TODO(synk): for very large M, mask the ragged last row tile in-kernel
        # instead of materializing a padded copy of the activations.
        xm = jnp.pad(xm, ((0, m_pad - M), (0, E_pad - E)))

    out_itemsize = jnp.dtype(x.dtype).itemsize
    cd = jnp.dtype(compute_dtype).itemsize
    vmem_bytes = (
        2 * tm * E_pad * cd                # x tile (double-buffered)
        + 2 * 2 * E_pad * th * cd          # W1^T + W2^T tiles (double-buffered)
        + 2 * th * E_pad * cd              # W3^T tile (double-buffered)
        + 2 * tm * E_pad * out_itemsize    # output tile (double-buffered)
        + tm * E_pad * 4                   # f32 accumulator scratch
        + 3 * tm * th * 4                  # h1 / h2 / gated f32 intermediates
    )
    vmem_limit = int(min(100 * 2**20, max(16 * 2**20, 2 * vmem_bytes)))

    out = pl.pallas_call(
        _swiglu_kernel,
        out_shape=jax.ShapeDtypeStruct((m_pad, E_pad), x.dtype),
        grid_spec=pltpu.PrefetchScalarGridSpec(
            num_scalar_prefetch=0,
            grid=grid,
            in_specs=[
                pl.BlockSpec((tm, E_pad), lambda i, j: (i, 0)),   # activation rows
                pl.BlockSpec((E_pad, th), lambda i, j: (0, j)),   # W1^T tile
                pl.BlockSpec((E_pad, th), lambda i, j: (0, j)),   # W2^T tile
                pl.BlockSpec((th, E_pad), lambda i, j: (j, 0)),   # W3^T tile
            ],
            out_specs=pl.BlockSpec((tm, E_pad), lambda i, j: (i, 0)),
            scratch_shapes=[pltpu.VMEM((tm, E_pad), jnp.float32)],
        ),
        compiler_params=pltpu.CompilerParams(
            dimension_semantics=("parallel", "arbitrary"),
            vmem_limit_bytes=vmem_limit),
    )(xm, w1t, w2t, w3t)

    return out[:M, :E].reshape(B, T, E)


# ----------------------------- pure-JAX reference --------------------------- #

def swiglu_ref(x, w1, w2, w3, compute_dtype=jnp.bfloat16):
    """Same dtype policy as the kernel (bf16 operands, f32 accumulation)."""
    xb = x.astype(compute_dtype)
    h1 = jnp.dot(xb, w1.T.astype(compute_dtype), preferred_element_type=jnp.float32)
    h2 = jnp.dot(xb, w2.T.astype(compute_dtype), preferred_element_type=jnp.float32)
    gated = (h1 * jax.nn.sigmoid(h1)) * h2
    out = jnp.dot(gated.astype(compute_dtype), w3.T.astype(compute_dtype),
                  preferred_element_type=jnp.float32)
    return out.astype(x.dtype)


# ----------------------------------- main ----------------------------------- #

if __name__ == "__main__":
    # Small shapes consistent with the module: embeddings_dims=48 gives
    # hidden_dims = int(2 * (4 * 48) / 3) = 128, block_size(seq)=16, batch=2.
    B, T, E = 2, 16, 48
    H = int(2 * (4 * E) / 3)          # 128

    key = jax.random.PRNGKey(0)
    kx, k1, k2, k3 = jax.random.split(key, 4)
    x = jax.random.normal(kx, (B, T, E), dtype=jnp.float32)
    # "nn.Linear" weights in PyTorch (out_features, in_features) layout.
    w1 = jax.random.normal(k1, (H, E), jnp.float32) / math.sqrt(E)
    w2 = jax.random.normal(k2, (H, E), jnp.float32) / math.sqrt(E)
    w3 = jax.random.normal(k3, (E, H), jnp.float32) / math.sqrt(H)

    # One-time weight packing (hoisted out of the forward call / cacheable).
    prepared = jax.tree_util.tree_map(jax.block_until_ready,
                                      prepare_swiglu_weights(w1, w2, w3))

    fwd = jax.jit(swiglu_forward)
    out = jax.block_until_ready(fwd(x, prepared))
    ref = swiglu_ref(x, w1, w2, w3)

    assert out.shape == (B, T, E) and out.dtype == jnp.float32
    assert jnp.allclose(out, ref, atol=2e-2, rtol=2e-2), "mismatch vs reference"
    print("KERNEL_OK")
</pallas_src>

<mosaic_0001>
module attributes {stable_mosaic.version = 11 : i64} {
  func.func @_swiglu_kernel(%arg0: i32, %arg1: i32, %arg2: memref<16x128xbf16, #tpu.memory_space<vmem>>, %arg3: memref<128x128xbf16, #tpu.memory_space<vmem>>, %arg4: memref<128x128xbf16, #tpu.memory_space<vmem>>, %arg5: memref<128x128xbf16, #tpu.memory_space<vmem>>, %arg6: memref<16x128xf32, #tpu.memory_space<vmem>>, %arg7: memref<16x128xf32, #tpu.memory_space<vmem>>) attributes {dimension_semantics = [#tpu.dimension_semantics<parallel>, #tpu.dimension_semantics<arbitrary>], iteration_bounds = array<i64: 2, 1>, scalar_prefetch = 0 : i64, scratch_operands = 1 : i64, tpu.core_type = #tpu.core_type<tc>, window_params = [{transform_indices = @transform_0, window_bounds = array<i64: 16, 128>}, {transform_indices = @transform_1, window_bounds = array<i64: 128, 128>}, {transform_indices = @transform_2, window_bounds = array<i64: 128, 128>}, {transform_indices = @transform_3, window_bounds = array<i64: 128, 128>}, {transform_indices = @transform_4, window_bounds = array<i64: 16, 128>}]} {
    %c0_i32 = arith.constant 0 : i32
    %0 = arith.cmpi eq, %arg1, %c0_i32 : i32
    %1 = arith.extui %0 : i1 to i32
    %c0_i32_0 = arith.constant 0 : i32
    %2 = arith.cmpi ne, %1, %c0_i32_0 : i32
    scf.if %2 {
      %cst_17 = arith.constant 0.000000e+00 : f32
      %24 = vector.broadcast %cst_17 : f32 to vector<16x128xf32>
      %c0_18 = arith.constant 0 : index
      %c0_19 = arith.constant 0 : index
      %25 = vector.load %arg7[%c0_18, %c0_19] : memref<16x128xf32, #tpu.memory_space<vmem>>, vector<16x128xf32>
      tpu.vector_store %arg7[%c0_18, %c0_19], %24 {strides = array<i32>} : memref<16x128xf32, #tpu.memory_space<vmem>>, vector<16x128xf32>,
    } else {
    }
    %c0 = arith.constant 0 : index
    %c0_1 = arith.constant 0 : index
    %3 = vector.load %arg2[%c0, %c0_1] : memref<16x128xbf16, #tpu.memory_space<vmem>>, vector<16x128xbf16>
    %c0_2 = arith.constant 0 : index
    %c0_3 = arith.constant 0 : index
    %4 = vector.load %arg3[%c0_2, %c0_3] : memref<128x128xbf16, #tpu.memory_space<vmem>>, vector<128x128xbf16>
    %cst = arith.constant dense<0.000000e+00> : vector<16x128xf32>
    %5 = tpu.matmul %3, %4, %cst {dimension_numbers = #tpu.dot_dimension_numbers<[1], [0], [0], [1], [0, 0, 1, 1], [], []>} : vector<16x128xbf16>, vector<128x128xbf16>, vector<16x128xf32> -> vector<16x128xf32>
    %c0_4 = arith.constant 0 : index
    %c0_5 = arith.constant 0 : index
    %6 = vector.load %arg4[%c0_4, %c0_5] : memref<128x128xbf16, #tpu.memory_space<vmem>>, vector<128x128xbf16>
    %cst_6 = arith.constant dense<0.000000e+00> : vector<16x128xf32>
    %7 = tpu.matmul %3, %6, %cst_6 {dimension_numbers = #tpu.dot_dimension_numbers<[1], [0], [0], [1], [0, 0, 1, 1], [], []>} : vector<16x128xbf16>, vector<128x128xbf16>, vector<16x128xf32> -> vector<16x128xf32>
    %8 = arith.negf %5 : vector<16x128xf32>
    %9 = math.exp %8 : vector<16x128xf32>
    %cst_7 = arith.constant 1.000000e+00 : f32
    %10 = vector.broadcast %cst_7 : f32 to vector<16x128xf32>
    %11 = arith.addf %10, %9 : vector<16x128xf32>
    %12 = arith.divf %10, %11 : vector<16x128xf32>
    %13 = arith.mulf %5, %12 : vector<16x128xf32>
    %14 = arith.mulf %13, %7 : vector<16x128xf32>
    %c0_8 = arith.constant 0 : index
    %c0_9 = arith.constant 0 : index
    %15 = vector.load %arg7[%c0_8, %c0_9] : memref<16x128xf32, #tpu.memory_space<vmem>>, vector<16x128xf32>
    %16 = arith.truncf %14 : vector<16x128xf32> to vector<16x128xbf16>
    %c0_10 = arith.constant 0 : index
    %c0_11 = arith.constant 0 : index
    %17 = vector.load %arg5[%c0_10, %c0_11] : memref<128x128xbf16, #tpu.memory_space<vmem>>, vector<128x128xbf16>
    %cst_12 = arith.constant dense<0.000000e+00> : vector<16x128xf32>
    %18 = tpu.matmul %16, %17, %cst_12 {dimension_numbers = #tpu.dot_dimension_numbers<[1], [0], [0], [1], [0, 0, 1, 1], [], []>} : vector<16x128xbf16>, vector<128x128xbf16>, vector<16x128xf32> -> vector<16x128xf32>
    %19 = arith.addf %15, %18 : vector<16x128xf32>
    %c0_13 = arith.constant 0 : index
    %c0_14 = arith.constant 0 : index
    %20 = vector.load %arg7[%c0_13, %c0_14] : memref<16x128xf32, #tpu.memory_space<vmem>>, vector<16x128xf32>
    tpu.vector_store %arg7[%c0_13, %c0_14], %19 {strides = array<i32>} : memref<16x128xf32, #tpu.memory_space<vmem>>, vector<16x128xf32>,
    %c0_i32_15 = arith.constant 0 : i32
    %21 = arith.cmpi eq, %arg1, %c0_i32_15 : i32
    %22 = arith.extui %21 : i1 to i32
    %c0_i32_16 = arith.constant 0 : i32
    %23 = arith.cmpi ne, %22, %c0_i32_16 : i32
    scf.if %23 {
      %c0_17 = arith.constant 0 : index
      %c0_18 = arith.constant 0 : index
      %24 = vector.load %arg7[%c0_17, %c0_18] : memref<16x128xf32, #tpu.memory_space<vmem>>, vector<16x128xf32>
      %c0_19 = arith.constant 0 : index
      %c0_20 = arith.constant 0 : index
      %25 = vector.load %arg6[%c0_19, %c0_20] : memref<16x128xf32, #tpu.memory_space<vmem>>, vector<16x128xf32>
      tpu.vector_store %arg6[%c0_19, %c0_20], %24 {strides = array<i32>} : memref<16x128xf32, #tpu.memory_space<vmem>>, vector<16x128xf32>,
    } else {
    }
    return
  }
  func.func @transform_0(%arg0: i32, %arg1: i32) -> (i32, i32) {
    %c0_i32 = arith.constant 0 : i32
    %c0_i32_0 = arith.constant 0 : i32
    return %arg0, %c0_i32 : i32, i32
  }
  func.func @transform_1(%arg0: i32, %arg1: i32) -> (i32, i32) {
    %c0_i32 = arith.constant 0 : i32
    %c0_i32_0 = arith.constant 0 : i32
    return %c0_i32, %arg1 : i32, i32
  }
  func.func @transform_2(%arg0: i32, %arg1: i32) -> (i32, i32) {
    %c0_i32 = arith.constant 0 : i32
    %c0_i32_0 = arith.constant 0 : i32
    return %c0_i32, %arg1 : i32, i32
  }
  func.func @transform_3(%arg0: i32, %arg1: i32) -> (i32, i32) {
    %c0_i32 = arith.constant 0 : i32
    %c0_i32_0 = arith.constant 0 : i32
    return %arg1, %c0_i32 : i32, i32
  }
  func.func @transform_4(%arg0: i32, %arg1: i32) -> (i32, i32) {
    %c0_i32 = arith.constant 0 : i32
    %c0_i32_0 = arith.constant 0 : i32
    return %arg0, %c0_i32 : i32, i32
  }
}

</mosaic_0001>

<bundles_post_ra>
// kernel: swiglu_forward.1
= control target key start
LH: loop header
LB: loop body
LE: loop exit
PB: predicated region body
PF: predicated region fallthrough
CT: control target
= control target key end

     0   :  { %9 = vsyncpa [#allocation4], 0  ;;  %s1393_s0 = inlined_call_operand.vmem [shape: bf16[32,128], index: 0, kind: input, shape index: {}]   ;;  %s1394_s1 = inlined_call_operand.vmem [shape: bf16[128,128], index: 1, kind: input, shape index: {}]   ;;  %s1395_s2 = inlined_call_operand.hbm [shape: bf16[128,128], index: 2, kind: input, shape index: {}]   ;;  %s1396_s3 = inlined_call_operand.hbm [shape: bf16[128,128], index: 3, kind: input, shape index: {}]   ;;  %s1397_s4 = inlined_call_operand.hbm [shape: f32[32,128], index: 4, kind: output, shape index: {}]  }
   0x1   :  { %10 = vsyncpa [#allocation7], 0 }
   0x2   :  { %11 = vsyncpa [#allocation5], 0 }
   0x3   :  { %13 = vsyncpa [#allocation5 + $0x1], 0  ;;  %s1179_s15 = smov 0   ;;  %s1181_s16 = smov 0  }
   0x4   :  { %s1183_s17 = smov 0   ;;  %s1185_s18 = smov 0  }
   0x5   :  { %s1187_s19 = smov 0   ;;  %s1189_s20 = smov 0  }
   0x6 LB: > { %s759_s21 = sadd.s32 4294967295, %s1143_s20   ;;  %s760_s22 = sadd.s32 4294967294, %s1143_s20   ;;  %s1143_s20 = sphi %s1189_s20, %s19_s20   ;;  %s1139_s19 = sphi %s1187_s19, %s1410_s19   ;;  %s1135_s18 = sphi %s1185_s18, %s1409_s18   ;;  %s1131_s17 = sphi %s1183_s17, %s1408_s17   ;;  %s1127_s16 = sphi %s1181_s16, %s1407_s16   ;;  %s1123_s15 = sphi %s1179_s15, %s1406_s15  }
   0x7   : > { %s31_s23 = sadd.s32 1, %s1139_s19  ;;  %s142_s24 = sadd.s32 1, %s1131_s17 }
   0x8   : > { %p33_p0 = scmp.ge.s32.totalorder %s31_s23, 2  ;;  %p152_p1 = scmp.ne.s32.totalorder %s1131_s17, %s1127_s16 }
   0x9   : > { %p153_p2 = scmp.eq.s32.totalorder %s759_s21, 1  ;;  %p158_p3 = scmp.ne.s32.totalorder %s1127_s16, %s1123_s15 }
   0xa   : > { %s1412_s23 = smov (%p33_p0, %s31_s23), 0  ;;  %p159_p5 = scmp.eq.s32.totalorder %s760_s22, 1 }
   0xb   : > { %p1219_p4 = por %p153_p2, %p152_p1  ;;  %s139_s26 = ssub.s32 %s1139_s19, %s1412_s23 }
   0xc   : > { %p761_p6 = scmp.ge.s32.totalorder %s1143_s20, 1  ;;  %p140_p7 = scmp.eq.s32.totalorder %s139_s26, 0 }
   0xd   : > { %s1399_s25 = scalar_select %p1219_p4, 1, 0 }
   0xe   : > { %p1226_p8 = por %p159_p5, %p158_p3  ;;  %p166_p9 = scmp.lt.s32.totalorder %s1143_s20, 3 }
   0xf   : > { %s1232_s28 = scalar_select %p140_p7, %s1131_s17, %s142_s24  }
  0x10   : > { %s1400_s27 = scalar_select %p1226_p8, 1, 0 }
  0x11   : > { %p1234_p10 = pnand %p761_p6, %p166_p9  ;;  %p1238_p11 = scmp.eq.s32.totalorder %s759_s21, 0 }
  0x12   : > { %s1145_s5 = smov [#allocation3]   ;;  %s1146_s8 = smov [#allocation6]  }
  0x13   : > { %p902_p12 = pneg %p1234_p10  ;;  %s187_s6 = sshll.u32 %s1145_s5, 4  ;;  %s188_s6 = int_to_ptr.vmem [resolvable:$true] %s187_s6 }
  0x14   : > { %s203_s9 = sshll.u32 %s1146_s8, 4  ;;  %s1018_s10 = scalar_lea.vmem %s188_s6, 1024  ;;  %s204_s9 = int_to_ptr.vmem [resolvable:$true] %s203_s9 }
  0x15   : > { %p1246_p13 = pnand %p1238_p11, %p902_p12  ;;  %p1019_p1 = scmp.ne.s32.totalorder %s188_s6, %s1018_s10 }
  0x16   : > { %p1026_p5 = scmp.lt.s32.totalorder %s188_s6, %s188_s6  ;;  %p1027_p6 = scmp.lt.s32.totalorder %s1018_s10, %s1018_s10 }
  0x17   : > { %p1009_p0 = pneg %p1246_p13 }
  0x18   : > { %p1028_p7 = por %p1027_p6, %p1026_p5 }
  0x19   : > { %p1021_p2 = pnand %p1019_p1, %p1009_p0 }
  0x1b   : > { %p1022_p3 = pneg %p1021_p2 }
  0x1d   : > { %p1029_p9 = pnand %p1028_p7, %p1022_p3 }
  0x1f   : > { %1032 = shalt.err (!%p1029_p9)
}
  0x20   : > { %s1147_s11 = smov 64   ;;  %s1148_s12 = smov 4  }
  0x21   : > { %905 = dma.hbm_to_vmem [thread:$0]  (!%p1246_p13), %s1395_s2, 1024, %s188_s6, [#allocation4], %s1147_s11, %s1147_s11, %s1148_s12  }
  0x22   : > { %s1044_s21 = scalar_lea.vmem %s204_s9, 1024  ;;  %p1052_p8 = scmp.lt.s32.totalorder %s204_s9, %s204_s9 }
  0x23   : > { %p1045_p12 = scmp.ne.s32.totalorder %s204_s9, %s1044_s21  ;;  %p1053_p4 = scmp.lt.s32.totalorder %s1044_s21, %s1044_s21 }
  0x25   : > { %p1047_p1 = pnand %p1045_p12, %p1009_p0  ;;  %p1054_p5 = por %p1053_p4, %p1052_p8 }
  0x27   : > { %p1048_p2 = pneg %p1047_p1 }
  0x29   : > { %p1055_p3 = pnand %p1054_p5, %p1048_p2 }
  0x2b   : > { %1058 = shalt.err (!%p1055_p3)
}
  0x2c   : > { %908 = dma.hbm_to_vmem [thread:$0]  (!%p1246_p13), %s1396_s3, 1024, %s204_s9, [#allocation7], %s1147_s11, %s1147_s11, %s1148_s12  }
  0x2d   : > { %228 = sbr.rel (%p1234_p10) target bundleno = 534 (0x216), region = 36 }
  0x32   : > { %1110 = dma.done.wait (%p1238_p11), [#allocation4], 1024  }
  0x33   : > { %1112 = vsyncadd (%p1238_p11), [#allocation4], 4294966272 }
  0x34   : > { %1114 = dma.done.wait (%p1238_p11), [#allocation7], 1024  }
  0x35   : > { %1116 = vsyncadd (%p1238_p11), [#allocation7], 4294966272  ;;  %v1149_v0 = vmov 0.0   ;;  %s770_s26 = sshll.u32 %s1135_s18, 1  ;;  %vm1150_vm0 = vmmov 0   ;;  %v974_v1 = vld [vmem:[%s1394_s1 + $0x38] sm:$0xff]  }
  0x36   : > { %832 = vmatprep.subr.bf16.mxu0 %v1149_v0  ;;  %852 = vmatprep.subr.bf16.mxu1 %v1149_v0  ;;  %p263_p4 = scmp.lt.s32.totalorder %s770_s26, 3  ;;  %v975_v2 = vld [vmem:[%s1394_s1 + $0x30] sm:$0xff]   ;;  %v976_v3 = vld [vmem:[%s1394_s1 + $0x28] sm:$0xff]   ;;  %v982_v4 = vld [vmem:[#allocation3 + $0x38] sm:$0xff]   ;;  %s804_s11 = sshll.u32 %s1135_s18, 8 }
  0x37   : > { %848 = vmatprep.mubr.msk.bf16.mxu0 %vm1150_vm0, %v1149_v0  ;;  %868 = vmatprep.mubr.msk.bf16.mxu1 %vm1150_vm0, %v1149_v0  ;;  %v977_v5 = vld [vmem:[%s1394_s1 + $0x20] sm:$0xff]   ;;  %v984_v6 = vld [vmem:[#allocation3 + $0x30] sm:$0xff]   ;;  %v978_v7 = vld [vmem:[%s1394_s1 + $0x18] sm:$0xff]   ;;  %s1346_s14 = scalar_lea.hbm %s1397_s4, %s804_s11  ;;  %p1404_p10 = scmp.ne.s32.totalorder %s1399_s25, 0 }
  0x38   : > { %s1414_s26 = smov (!%p263_p4, %s770_s26), 3  ;;  %833 = vmatpush3.bf16.msra.mxu0 %v974_v1  ;;  %853 = vmatpush3.bf16.msra.mxu1 %v982_v4  ;;  %v985_v8 = vld [vmem:[#allocation3 + $0x28] sm:$0xff]   ;;  %v979_v9 = vld [vmem:[%s1394_s1 + $0x10] sm:$0xff]   ;;  %v986_v10 = vld [vmem:[#allocation3 + $0x20] sm:$0xff]   ;;  %s1151_s18 = smov [#allocation8]  }
  0x39   : > { %834 = vmatprep.subr.bf16.mxu0 %v1149_v0  ;;  %s771_s7 = sshll.u32 %s1414_s26, 2  ;;  %854 = vmatprep.subr.bf16.mxu1 %v1149_v0  ;;  %v980_v11 = vld [vmem:[%s1394_s1 + $0x8] sm:$0xff]   ;;  %v987_v12 = vld [vmem:[#allocation3 + $0x18] sm:$0xff]   ;;  %v981_v13 = vld [vmem:[%s1394_s1] sm:$0xff]   ;;  %s1063_s24 = sshll.u32 %s1151_s18, 4  ;;  %s1064_s24 = int_to_ptr.vmem [resolvable:$false] %s1063_s24 }
  0x3a   : > { %s1299_s12 = scalar_lea.vmem %s1393_s0, %s771_s7  ;;  %v988_v14 = vld [vmem:[#allocation3 + $0x10] sm:$0xff]   ;;  %v989_v16 = vld [vmem:[#allocation3 + $0x8] sm:$0xff]   ;;  %v990_v17 = vld [vmem:[#allocation3] sm:$0xff]   ;;  %s259_s7 = sand.u32 1, %s1127_s16  }
  0x3b   : > { %v983_v15 = vld [vmem:[%s1299_s12] sm:$0xff]   ;;  %v991_v18 = vld [vmem:[#allocation6 + $0x38] sm:$0xff]   ;;  %v992_v19 = vld [vmem:[#allocation6 + $0x30] sm:$0xff]   ;;  %s769_s8 = sshll.u32 %s259_s7, 4  ;;  %s1348_s21 = scalar_lea.sflag [#allocation5], %s259_s7 }
  0x3c   : > { %835 = vmatpush3.bf16.msra.mxu0 %v975_v2  ;;  %855 = vmatpush3.bf16.msra.mxu1 %v984_v6  ;;  %v993_v20 = vld [vmem:[#allocation6 + $0x28] sm:$0xff]   ;;  %v994_v21 = vld [vmem:[#allocation6 + $0x20] sm:$0xff]   ;;  %v995_v22 = vld [vmem:[#allocation6 + $0x18] sm:$0xff]   ;;  %s261_s9 = scalar_lea.vmem [#allocation8], %s769_s8  ;;  %s1065_s26 = scalar_lea.vmem %s1064_s24, 512 }
  0x3d   : > { %836 = vmatprep.subr.bf16.mxu0 %v1149_v0  ;;  %856 = vmatprep.subr.bf16.mxu1 %v1149_v0  ;;  %v996_v23 = vld [vmem:[#allocation6 + $0x10] sm:$0xff]   ;;  %v997_v24 = vld [vmem:[#allocation6 + $0x8] sm:$0xff]   ;;  %v998_v25 = vld [vmem:[#allocation6] sm:$0xff]   ;;  %s648_s10 = sshll.u32 %s261_s9, 4  ;;  %s1341_s10 = int_to_ptr.vmem [resolvable:$true] %s648_s10 }
  0x3e   : > { %s1059_s22 = scalar_lea.vmem %s1341_s10, 256  ;;  %p1066_p0 = scmp.lt.s32.totalorder %s1341_s10, %s1064_s24 }
  0x3f   : > { %p1060_p8 = scmp.ne.s32.totalorder %s1341_s10, %s1059_s22  ;;  %p1067_p6 = scmp.lt.s32.totalorder %s1065_s26, %s1059_s22 }
  0x40   : > { %837 = vmatpush3.bf16.msra.mxu0 %v976_v3  ;;  %857 = vmatpush3.bf16.msra.mxu1 %v985_v8 }
  0x41   : > { %838 = vmatprep.subr.bf16.mxu0 %v1149_v0  ;;  %858 = vmatprep.subr.bf16.mxu1 %v1149_v0  ;;  %p1061_p11 = pnand %p1060_p8, %p1404_p10  ;;  %p1068_p7 = por %p1067_p6, %p1066_p0 }
  0x43   : > { %p1062_p13 = pneg %p1061_p11 }
  0x44   : > { %839 = vmatpush3.bf16.msra.mxu0 %v977_v5  ;;  %859 = vmatpush3.bf16.msra.mxu1 %v986_v10 }
  0x45   : > { %840 = vmatprep.subr.bf16.mxu0 %v1149_v0  ;;  %860 = vmatprep.subr.bf16.mxu1 %v1149_v0  ;;  %p1069_p9 = pnand %p1068_p7, %p1062_p13 }
  0x48   : > { %841 = vmatpush3.bf16.msra.mxu0 %v978_v7  ;;  %861 = vmatpush3.bf16.msra.mxu1 %v987_v12 }
  0x49   : > { %842 = vmatprep.subr.bf16.mxu0 %v1149_v0  ;;  %862 = vmatprep.subr.bf16.mxu1 %v1149_v0 }
  0x4c   : > { %843 = vmatpush3.bf16.msra.mxu0 %v979_v9  ;;  %863 = vmatpush3.bf16.msra.mxu1 %v988_v14 }
  0x4d   : > { %844 = vmatprep.subr.bf16.mxu0 %v1149_v0  ;;  %864 = vmatprep.subr.bf16.mxu1 %v1149_v0 }
  0x50   : > { %845 = vmatpush3.bf16.msra.mxu0 %v980_v11  ;;  %865 = vmatpush3.bf16.msra.mxu1 %v989_v16 }
  0x51   : > { %846 = vmatprep.subr.bf16.mxu0 %v1149_v0  ;;  %866 = vmatprep.subr.bf16.mxu1 %v1149_v0 }
  0x54   : > { %847 = vmatpush3.bf16.msra.mxu0 %v981_v13  ;;  %867 = vmatpush3.bf16.msra.mxu1 %v990_v17 }
  0x55   : > { %872 = vmatprep.subr.bf16.mxu0 %v1149_v0 }
  0x57   : > { %849 = vmatmul.mubr.bf16.vlgmr.msra.gmra.mxu0 %v983_v15  ;;  %869 = vmatmul.mubr.bf16.vlgmr.msra.gmra.mxu1 %v983_v15 }
  0x58   : > { %888 = vmatprep.mubr.msk.bf16.mxu0 %vm1150_vm0, %v1149_v0  ;;  %873 = vmatpush3.bf16.msra.mxu0 %v991_v18 }
  0x59   : > { %874 = vmatprep.subr.bf16.mxu0 %v1149_v0 }
  0x5c   : > { %875 = vmatpush3.bf16.msra.mxu0 %v992_v19 }
  0x5d   : > { %876 = vmatprep.subr.bf16.mxu0 %v1149_v0 }
  0x60   : > { %877 = vmatpush3.bf16.msra.mxu0 %v993_v20 }
  0x61   : > { %878 = vmatprep.subr.bf16.mxu0 %v1149_v0 }
  0x64   : > { %879 = vmatpush3.bf16.msra.mxu0 %v994_v21 }
  0x65   : > { %880 = vmatprep.subr.bf16.mxu0 %v1149_v0 }
  0x68   : > { %881 = vmatpush3.bf16.msra.mxu0 %v995_v22 }
  0x69   : > { %882 = vmatprep.subr.bf16.mxu0 %v1149_v0 }
  0x6c   : > { %883 = vmatpush3.bf16.msra.mxu0 %v996_v23 }
  0x6d   : > { %884 = vmatprep.subr.bf16.mxu0 %v1149_v0 }
  0x70   : > { %885 = vmatpush3.bf16.msra.mxu0 %v997_v24 }
  0x71   : > { %886 = vmatprep.subr.bf16.mxu0 %v1149_v0 }
  0x74   : > { %887 = vmatpush3.bf16.msra.mxu0 %v998_v25 }
 0x117   : > { %v387_v26 = vpop.f32.mrf.mxu0  ;;  %v492_v32 = vpop.f32.mrf.mxu1 }
 0x118   : > { %v789_v27 = vmul.f32 -1.442695, %v387_v26 }
 0x119   : > { %v850_v28 = vpop.f32.mrf.mxu0  ;;  %v870_v33 = vpop.f32.mrf.mxu1 }
 0x11a   : > { %999 = vpow2.f32 %v789_v27 }
 0x11b   : > { %v390_v29 = vpop.f32.mrf.mxu0  ;;  %v495_v34 = vpop.f32.mrf.mxu1 }
 0x11c   : > { %v790_v30 = vmul.f32 -1.442695, %v390_v29 }
 0x11d   : > { %v851_v31 = vpop.f32.mrf.mxu0  ;;  %v871_v35 = vpop.f32.mrf.mxu1 }
 0x11e   : > { %1001 = vpow2.f32 %v790_v30 }
 0x127   : > { %v1000_v36 = vpop.eup %999 }
 0x128   : > { %v505_v37 = vadd.f32 1.0, %v1000_v36 }
 0x12a   : > { %1003 = vrcp.f32 %v505_v37 }
 0x12b   : > { %v1002_v38 = vpop.eup %1001 }
 0x12c   : > { %v506_v39 = vadd.f32 1.0, %v1002_v38 }
 0x12e   : > { %1005 = vrcp.f32 %v506_v39 }
 0x137   : > { %v1004_v40 = vpop.eup %1003 }
 0x138   : > { %v511_v41 = vmul.f32 %v1004_v40, %v387_v26 }
 0x13a   : > { %v513_v44 = vmul.f32 %v511_v41, %v492_v32 }
 0x13b   : > { %v1006_v42 = vpop.eup %1005 }
 0x13c   : > { %v512_v43 = vmul.f32 %v1006_v42, %v390_v29 }
 0x13e   : > { %v514_v45 = vmul.f32 %v512_v43, %v495_v34 }
 0x140   : > { %v517_v46 = vpack.c.bf16 %v514_v45, %v513_v44 }
 0x142   : > { %889 = vmatmul.mubr.bf16.vlgmr.msra.gmra.mxu0 %v517_v46 }
 0x202   : > { %v616_v47 = vpop.f32.mrf.mxu0 }
 0x203   : > { %632 = vst [vmem:[%s261_s9] sm:$0xff] %v616_v47 }
 0x204   : > { %v890_v48 = vpop.f32.mrf.mxu0 }
 0x206   : > { %v619_v49 = vpop.f32.mrf.mxu0 }
 0x207   : > { %633 = vst [vmem:[%s261_s9 + $0x8] sm:$0xff] %v619_v49 }
 0x208   : > { %v891_v50 = vpop.f32.mrf.mxu0 }
 0x209   : > { %1072 = shalt.err (!%p1069_p9)
}
 0x20a   : > { %s1073_s29 = scalar_lea.hbm %s1346_s14, 256  ;;  %s1077_s6 = scalar_lea.hbm %s1397_s4, 512 }
 0x20b   : > { %p1074_p12 = scmp.ne.s32.totalorder %s1346_s14, %s1073_s29  ;;  %p1078_p5 = scmp.lt.s32.totalorder %s1346_s14, %s1397_s4 }
 0x20c   : > { %p1079_p3 = scmp.lt.s32.totalorder %s1077_s6, %s1073_s29 }
 0x20d   : > { %p1075_p1 = pnand %p1074_p12, %p1404_p10 }
 0x20e   : > { %p1080_p4 = por %p1079_p3, %p1078_p5 }
 0x20f   : > { %p1076_p2 = pneg %p1075_p1 }
 0x211   : > { %p1081_p8 = pnand %p1080_p4, %p1076_p2 }
 0x213   : > { %1084 = shalt.err (!%p1081_p8)
}
 0x214   : > { %s1152_s9 = smov 128   ;;  %s1153_s11 = smov 8  }
 0x215   : > { %900 = dma.vmem_to_hbm [thread:$0]  (%p1404_p10), %s1341_s10, 256, %s1346_s14, %s1348_s21, %s1152_s9, %s1152_s9, %s1153_s11  }
 0x216 PF: > { %p917_p11 = scmp.ge.s32.totalorder %s1143_s20, 2  ;;  %s663_s12 = sand.u32 1, %s1123_s15  }
 0x217   : > { %p1405_p13 = scmp.ne.s32.totalorder %s1400_s27, 0  ;;  %s664_s13 = scalar_lea.sflag [#allocation5], %s663_s12 }
 0x219   : > { %p910_p0 = pnand %p917_p11, %p1405_p13 }
 0x21b   : > { %p911_p6 = pneg %p910_p0 }
 0x21d   : > { %1118 = dma.done.wait (%p911_p6), %s664_s13, 256  }
 0x21e   : > { %1120 = vsyncadd (%p911_p6), %s664_s13, 4294967040  ;;  %s19_s20 = sadd.s32 1, %s1143_s20   ;;  %s1406_s15 = smov %s1127_s16 }
 0x21f   : > { %p16_p7 = scmp.ge.s32.totalorder %s19_s20, 4   ;;  %s1407_s16 = smov %s1131_s17 }
 0x220   : > { %s1408_s17 = smov %s1232_s28  ;;  %s1409_s18 = smov %s1139_s19 }
 0x221   : > { %s1410_s19 = smov %s1412_s23  ;;  %18 = sbr.rel (!%p16_p7) target bundleno = 6 (0x6), region = 93 }
 0x226   :  { %669 = vsyncpa [#allocation4], 1 }
 0x227   :  { %671 = vsyncpa [#allocation4 + $0x1], 1 }
 0x228   :  { %672 = vsyncpa [#allocation7], 1 }
 0x229   :  { %673 = vsyncpa [#allocation5], 1 }
 0x22a   :  { %675 = vsyncpa [#allocation5 + $0x1], 1 }

</bundles_post_ra>
